<compile_context>
chip_gen: v5e
topology: v5e:2x2
jax: 0.10.0
libtpu: 0.0.40
codegen_flags: <defaults>
</compile_context>

<pallas_src>
import functools

import jax
import jax.numpy as jnp
from jax.experimental import pallas as pl
from jax.experimental.pallas import tpu as pltpu


def _critic_kernel(x_ref,
                   w1_ref, b1_ref, w2_ref, b2_ref, w3_ref, b3_ref,
                   w4_ref, b4_ref, w5_ref, b5_ref, w6_ref, b6_ref,
                   o_ref, *, chunk, n_chunks):
    """Fused fc1..fc6 + ReLUs + residual adds over one batch tile.

    x_ref : (batch_tile, state_dim) f32, batch-major (exactly as the caller holds it)
    w1    : (hidden, state_dim) f32;  w2..w6: (out, in) bf16;  b1..b6: (out, 1) f32
    o_ref : (n_chunks, output_dim, chunk) f32 — lane-dense per-chunk stores
    """
    # Resident weights / biases: loaded once per grid step (a handful of vregs).
    w1 = w1_ref[...]
    w2 = w2_ref[...]
    w3 = w3_ref[...]
    w4 = w4_ref[...]
    w5 = w5_ref[...]
    w6 = w6_ref[...]
    b1 = b1_ref[...]
    b2 = b2_ref[...]
    b3 = b3_ref[...]
    b4 = b4_ref[...]
    b5 = b5_ref[...]
    b6 = b6_ref[...]
    # NOTE: biases stay (out, 1); pre-broadcasting all six to (out, chunk) would keep
    # ~30-60 extra vregs live across the chunk loop and cause spills, so the (cheap)
    # lane-broadcast happens inside the add instead.

    nt_dims = (((1,), (1,)), ((), ()))   # contract last dims of both: W @ a^T

    def lin(a_f32, w_bf16, b_f32):
        # (out, in) @ (in, chunk) on the MXU: bf16 operands, f32 accumulation.
        return (jnp.dot(w_bf16, a_f32.astype(jnp.bfloat16),
                        preferred_element_type=jnp.float32) + b_f32)

    relu = lambda v: jnp.maximum(v, 0.0)

    def run_chunk(c, start):
        xc = x_ref[pl.ds(start, chunk), :]            # (chunk, state_dim) f32, batch-major
        # fc1 straight into feature-major: h1^T = W1 @ xc^T (transposed-RHS matmul, f32,
        # so the lane-sparse x slice needs no bf16 cast and no explicit transpose).
        h = relu(jax.lax.dot_general(w1, xc, nt_dims,
                                     preferred_element_type=jnp.float32) + b1)
        out = h                                       # residual path stays f32
        h = relu(lin(h, w2, b2))
        h = relu(lin(h, w3, b3))
        out = h + out
        h = relu(lin(out, w4, b4))
        h = relu(lin(h, w5, b5))
        h = out + h
        # fc6: (output_dim, chunk) — lane-dense store at a dynamic leading-dim index.
        o_ref[c] = lin(h, w6, b6).astype(o_ref.dtype)

    if n_chunks == 1:
        run_chunk(0, 0)
    else:
        def body(c, carry):
            run_chunk(c, pl.multiple_of(c * chunk, chunk))
            return carry
        jax.lax.fori_loop(0, n_chunks, body, None, unroll=2)


def _pick_batch_tile(B):
    """Large, lane-aligned batch tiles amortize the ~0.35us per-grid-step overhead; the
    in-kernel sub-chunk loop keeps the vreg live set bounded.  Prefer >= 2 grid steps so
    v7x can shard the batch across its two TensorCores, but never force a split of a
    small batch (two tiny steps are pure overhead on single-TC v5e/v6e)."""
    if B <= 512:
        return B
    for t in (16384, 8192, 4096, 2048, 1024, 512, 256, 128):
        if B % t == 0 and B // t >= 2:
            return t
    return B  # ragged batch: single whole-batch step (block == full dims is legal)


def _pick_chunk(batch_tile):
    """~256 lanes per inner chunk: full MXU N width on v6e/v7x while the transient live
    set (lane-sparse x slice + f32 activations + residual) stays within the 64-vreg file."""
    for c in (256, 128):
        if batch_tile % c == 0:
            return c
    return batch_tile


def critic_forward(x, params, *, batch_tile=None):
    """Fused CriticNetwork forward via pallas_call.

    x: (B, state_dim) float32 (PyTorch layout; used as-is — no host transpose/cast).
    params: w1 (hidden, state_dim) f32, w2..w6 (out, in) bf16, b1..b6 (out, 1) f32.
    Returns (B, output_dim) float32.
    """
    B, state_dim = x.shape
    output_dim = params["w6"].shape[0]

    if batch_tile is None:
        batch_tile = _pick_batch_tile(B)
    assert B % batch_tile == 0, "batch must be divisible by batch_tile"
    chunk = _pick_chunk(batch_tile)
    n_chunks = batch_tile // chunk
    total_chunks = B // chunk
    grid = (B // batch_tile,)

    # x streamed directly in its native (B, state_dim) layout — contiguous DMA blocks.
    x_spec = pl.BlockSpec((batch_tile, state_dim), lambda i: (i, 0))
    # Per-chunk lane-dense output blocks; flattened back to (B, output_dim) below.
    out_spec = pl.BlockSpec((n_chunks, output_dim, chunk), lambda i: (i, 0, 0))

    def resident(arr):
        # Whole-array resident weight/bias; constant index_map -> no re-DMA across steps.
        return pl.BlockSpec(arr.shape, lambda i: (0, 0))

    ordered, in_specs = [], [x_spec]
    for k in range(1, 7):
        w, b = params[f"w{k}"], params[f"b{k}"]
        ordered += [w, b]
        in_specs += [resident(w), resident(b)]

    flops = 2 * B * sum(int(params[f"w{k}"].shape[0]) * int(params[f"w{k}"].shape[1])
                        for k in range(1, 7))
    bytes_accessed = int(x.size * x.dtype.itemsize
                         + sum(int(a.size) * a.dtype.itemsize for a in ordered)
                         + B * output_dim * 4)

    kernel = functools.partial(_critic_kernel, chunk=chunk, n_chunks=n_chunks)

    y3 = pl.pallas_call(
        kernel,
        out_shape=jax.ShapeDtypeStruct((total_chunks, output_dim, chunk), jnp.float32),
        grid_spec=pltpu.PrefetchScalarGridSpec(
            num_scalar_prefetch=0,
            grid=grid,
            in_specs=in_specs,
            out_specs=out_spec,
        ),
        compiler_params=pltpu.CompilerParams(
            # TODO(synk): on v7x, confirm this axis actually shards across both
            # TensorCores; if not, switch it to pltpu.CORE_PARALLEL.
            dimension_semantics=("parallel",),
            vmem_limit_bytes=32 * 1024 * 1024,
        ),
        cost_estimate=pl.CostEstimate(
            flops=flops, transcendentals=0, bytes_accessed=bytes_accessed),
    )(x, *ordered)

    # (total_chunks, output_dim, chunk) -> (B, output_dim).  For output_dim == 1 the
    # transpose is degenerate, so this is a metadata-only reshape of a tiny array.
    return jnp.transpose(y3, (0, 2, 1)).reshape(B, output_dim)


def init_params(key, state_dim, hidden_dim, output_dim):
    """torch.nn.Linear-style init (uniform +/- 1/sqrt(fan_in)); weights are (out, in).

    fc1 weight and every bias stay f32 (fc1 runs as an f32 MXU matmul so the lane-sparse
    x tile needs no bf16 cast; biases add into the f32 accumulator).  fc2..fc6 weights
    are bf16 for the bf16-native MXU.
    """
    dims = [
        (state_dim, hidden_dim),          # fc1
        (hidden_dim, hidden_dim // 2),    # fc2
        (hidden_dim // 2, hidden_dim),    # fc3
        (hidden_dim, hidden_dim // 2),    # fc4
        (hidden_dim // 2, hidden_dim),    # fc5
        (hidden_dim, output_dim),         # fc6
    ]
    params = {}
    for idx, (fan_in, fan_out) in enumerate(dims, start=1):
        key, kw, kb = jax.random.split(key, 3)
        bound = 1.0 / float(fan_in) ** 0.5
        w = jax.random.uniform(kw, (fan_out, fan_in), jnp.float32,
                               minval=-bound, maxval=bound)
        b = jax.random.uniform(kb, (fan_out, 1), jnp.float32,
                               minval=-bound, maxval=bound)
        params[f"w{idx}"] = w if idx == 1 else w.astype(jnp.bfloat16)
        params[f"b{idx}"] = b
    return params


def critic_ref_f32(x, params):
    """Pure-f32 JAX reference of the PyTorch forward (weights upcast to f32)."""
    relu = lambda v: jnp.maximum(v, 0.0)
    p = {k: v.astype(jnp.float32) for k, v in params.items()}

    def lin(h, k):
        return (jnp.dot(h, p[f"w{k}"].T, precision=jax.lax.Precision.HIGHEST)
                + p[f"b{k}"][:, 0])

    h = relu(lin(x, 1)); out = h
    h = relu(lin(h, 2)); h = relu(lin(h, 3)); out = h + out
    h = relu(lin(out, 4)); h = relu(lin(h, 5)); h = out + h
    return lin(h, 6)


def critic_ref_mixed(x, params):
    """Mirrors the kernel numerics: fc1 in f32, fc2..fc6 bf16 operands with f32
    accumulation, f32 biases / ReLUs / residual adds."""
    relu = lambda v: jnp.maximum(v, 0.0)

    def lin_bf16(h, k):
        w, b = params[f"w{k}"], params[f"b{k}"]
        return (jnp.dot(h.astype(jnp.bfloat16), w.T,
                        preferred_element_type=jnp.float32) + b[:, 0])

    h = relu(jnp.dot(x, params["w1"].T, precision=jax.lax.Precision.HIGHEST)
             + params["b1"][:, 0])
    out = h
    h = relu(lin_bf16(h, 2)); h = relu(lin_bf16(h, 3)); out = h + out
    h = relu(lin_bf16(out, 4)); h = relu(lin_bf16(h, 5)); h = out + h
    return lin_bf16(h, 6)


if __name__ == "__main__":
    key = jax.random.PRNGKey(0)
    key, kx1, kx2 = jax.random.split(key, 3)

    state_dim, hidden_dim, output_dim = 8, 32, 1
    params = init_params(key, state_dim, hidden_dim, output_dim)

    # Small batch: single grid step, single in-kernel chunk (the v5e/v6e small-B path).
    x_small = jax.random.normal(kx1, (256, state_dim), jnp.float32)
    y_small = jax.block_until_ready(critic_forward(x_small, params))
    assert y_small.shape == (256, output_dim)

    # Larger batch: 2 "parallel" grid steps x 4 in-kernel 256-lane sub-chunks.
    x_big = jax.random.normal(kx2, (2048, state_dim), jnp.float32)
    y_big = jax.block_until_ready(critic_forward(x_big, params))
    assert y_big.shape == (2048, output_dim)

    for x_t, y_t in ((x_small, y_small), (x_big, y_big)):
        y_mixed = critic_ref_mixed(x_t, params)
        assert jnp.allclose(y_t, y_mixed, atol=2e-2, rtol=2e-2), \
            "mismatch vs mixed-precision reference"
        y_f32 = critic_ref_f32(x_t, params)
        assert jnp.allclose(y_t, y_f32, atol=5e-2, rtol=5e-2), \
            "mismatch vs f32 reference"

    # TODO(synk): predict()'s torch.no_grad()/.item() is host-side control, not a kernel op.
    print("KERNEL_OK")
</pallas_src>

<mosaic_0001>
module attributes {stable_mosaic.version = 11 : i64} {
  func.func @_critic_kernel(%arg0: i32, %arg1: memref<256x8xf32, #tpu.memory_space<vmem>>, %arg2: memref<32x8xf32, #tpu.memory_space<vmem>>, %arg3: memref<32x1xf32, #tpu.memory_space<vmem>>, %arg4: memref<16x32xbf16, #tpu.memory_space<vmem>>, %arg5: memref<16x1xf32, #tpu.memory_space<vmem>>, %arg6: memref<32x16xbf16, #tpu.memory_space<vmem>>, %arg7: memref<32x1xf32, #tpu.memory_space<vmem>>, %arg8: memref<16x32xbf16, #tpu.memory_space<vmem>>, %arg9: memref<16x1xf32, #tpu.memory_space<vmem>>, %arg10: memref<32x16xbf16, #tpu.memory_space<vmem>>, %arg11: memref<32x1xf32, #tpu.memory_space<vmem>>, %arg12: memref<1x32xbf16, #tpu.memory_space<vmem>>, %arg13: memref<1x1xf32, #tpu.memory_space<vmem>>, %arg14: memref<1x1x256xf32, #tpu.memory_space<vmem>>) attributes {dimension_semantics = [#tpu.dimension_semantics<parallel>], iteration_bounds = array<i64: 1>, scalar_prefetch = 0 : i64, scratch_operands = 0 : i64, tpu.core_type = #tpu.core_type<tc>, window_params = [{transform_indices = @transform_0, window_bounds = array<i64: 256, 8>}, {pipeline_mode = #tpu.pipeline_mode<synchronous>, transform_indices = @transform_1, window_bounds = array<i64: 32, 8>}, {pipeline_mode = #tpu.pipeline_mode<synchronous>, transform_indices = @transform_2, window_bounds = array<i64: 32, 1>}, {pipeline_mode = #tpu.pipeline_mode<synchronous>, transform_indices = @transform_3, window_bounds = array<i64: 16, 32>}, {pipeline_mode = #tpu.pipeline_mode<synchronous>, transform_indices = @transform_4, window_bounds = array<i64: 16, 1>}, {pipeline_mode = #tpu.pipeline_mode<synchronous>, transform_indices = @transform_5, window_bounds = array<i64: 32, 16>}, {pipeline_mode = #tpu.pipeline_mode<synchronous>, transform_indices = @transform_6, window_bounds = array<i64: 32, 1>}, {pipeline_mode = #tpu.pipeline_mode<synchronous>, transform_indices = @transform_7, window_bounds = array<i64: 16, 32>}, {pipeline_mode = #tpu.pipeline_mode<synchronous>, transform_indices = @transform_8, window_bounds = array<i64: 16, 1>}, {pipeline_mode = #tpu.pipeline_mode<synchronous>, transform_indices = @transform_9, window_bounds = array<i64: 32, 16>}, {pipeline_mode = #tpu.pipeline_mode<synchronous>, transform_indices = @transform_10, window_bounds = array<i64: 32, 1>}, {pipeline_mode = #tpu.pipeline_mode<synchronous>, transform_indices = @transform_11, window_bounds = array<i64: 1, 32>}, {pipeline_mode = #tpu.pipeline_mode<synchronous>, transform_indices = @transform_12, window_bounds = array<i64: 1, 1>}, {transform_indices = @transform_13, window_bounds = array<i64: 1, 1, 256>}]} {
    %c0 = arith.constant 0 : index
    %c0_0 = arith.constant 0 : index
    %0 = vector.load %arg2[%c0, %c0_0] : memref<32x8xf32, #tpu.memory_space<vmem>>, vector<32x8xf32>
    %c0_1 = arith.constant 0 : index
    %c0_2 = arith.constant 0 : index
    %1 = vector.load %arg4[%c0_1, %c0_2] : memref<16x32xbf16, #tpu.memory_space<vmem>>, vector<16x32xbf16>
    %c0_3 = arith.constant 0 : index
    %c0_4 = arith.constant 0 : index
    %2 = vector.load %arg6[%c0_3, %c0_4] : memref<32x16xbf16, #tpu.memory_space<vmem>>, vector<32x16xbf16>
    %c0_5 = arith.constant 0 : index
    %c0_6 = arith.constant 0 : index
    %3 = vector.load %arg8[%c0_5, %c0_6] : memref<16x32xbf16, #tpu.memory_space<vmem>>, vector<16x32xbf16>
    %c0_7 = arith.constant 0 : index
    %c0_8 = arith.constant 0 : index
    %4 = vector.load %arg10[%c0_7, %c0_8] : memref<32x16xbf16, #tpu.memory_space<vmem>>, vector<32x16xbf16>
    %c0_9 = arith.constant 0 : index
    %c0_10 = arith.constant 0 : index
    %5 = vector.load %arg12[%c0_9, %c0_10] : memref<1x32xbf16, #tpu.memory_space<vmem>>, vector<1x32xbf16>
    %c0_11 = arith.constant 0 : index
    %c0_12 = arith.constant 0 : index
    %6 = vector.load %arg3[%c0_11, %c0_12] : memref<32x1xf32, #tpu.memory_space<vmem>>, vector<32x1xf32>
    %c0_13 = arith.constant 0 : index
    %c0_14 = arith.constant 0 : index
    %7 = vector.load %arg5[%c0_13, %c0_14] : memref<16x1xf32, #tpu.memory_space<vmem>>, vector<16x1xf32>
    %c0_15 = arith.constant 0 : index
    %c0_16 = arith.constant 0 : index
    %8 = vector.load %arg7[%c0_15, %c0_16] : memref<32x1xf32, #tpu.memory_space<vmem>>, vector<32x1xf32>
    %c0_17 = arith.constant 0 : index
    %c0_18 = arith.constant 0 : index
    %9 = vector.load %arg9[%c0_17, %c0_18] : memref<16x1xf32, #tpu.memory_space<vmem>>, vector<16x1xf32>
    %c0_19 = arith.constant 0 : index
    %c0_20 = arith.constant 0 : index
    %10 = vector.load %arg11[%c0_19, %c0_20] : memref<32x1xf32, #tpu.memory_space<vmem>>, vector<32x1xf32>
    %c0_21 = arith.constant 0 : index
    %c0_22 = arith.constant 0 : index
    %11 = vector.load %arg13[%c0_21, %c0_22] : memref<1x1xf32, #tpu.memory_space<vmem>>, vector<1x1xf32>
    %c0_23 = arith.constant 0 : index
    %c0_24 = arith.constant 0 : index
    %12 = vector.load %arg1[%c0_23, %c0_24] : memref<256x8xf32, #tpu.memory_space<vmem>>, vector<256x8xf32>
    %cst = arith.constant dense<0.000000e+00> : vector<32x256xf32>
    %13 = tpu.matmul %0, %12, %cst {dimension_numbers = #tpu.dot_dimension_numbers<[1], [1], [0], [0], [0, 0, 1, 0], [], []>} : vector<32x8xf32>, vector<256x8xf32>, vector<32x256xf32> -> vector<32x256xf32>
    %14 = vector.broadcast %6 : vector<32x1xf32> to vector<32x256xf32>
    %15 = arith.addf %13, %14 : vector<32x256xf32>
    %cst_25 = arith.constant 0.000000e+00 : f32
    %16 = vector.broadcast %cst_25 : f32 to vector<32x256xf32>
    %17 = arith.maximumf %15, %16 : vector<32x256xf32>
    %18 = arith.truncf %17 : vector<32x256xf32> to vector<32x256xbf16>
    %cst_26 = arith.constant dense<0.000000e+00> : vector<16x256xf32>
    %19 = tpu.matmul %1, %18, %cst_26 {dimension_numbers = #tpu.dot_dimension_numbers<[1], [0], [0], [1], [0, 0, 1, 1], [], []>} : vector<16x32xbf16>, vector<32x256xbf16>, vector<16x256xf32> -> vector<16x256xf32>
    %20 = vector.broadcast %7 : vector<16x1xf32> to vector<16x256xf32>
    %21 = arith.addf %19, %20 : vector<16x256xf32>
    %cst_27 = arith.constant 0.000000e+00 : f32
    %22 = vector.broadcast %cst_27 : f32 to vector<16x256xf32>
    %23 = arith.maximumf %21, %22 : vector<16x256xf32>
    %24 = arith.truncf %23 : vector<16x256xf32> to vector<16x256xbf16>
    %cst_28 = arith.constant dense<0.000000e+00> : vector<32x256xf32>
    %25 = tpu.matmul %2, %24, %cst_28 {dimension_numbers = #tpu.dot_dimension_numbers<[1], [0], [0], [1], [0, 0, 1, 1], [], []>} : vector<32x16xbf16>, vector<16x256xbf16>, vector<32x256xf32> -> vector<32x256xf32>
    %26 = vector.broadcast %8 : vector<32x1xf32> to vector<32x256xf32>
    %27 = arith.addf %25, %26 : vector<32x256xf32>
    %cst_29 = arith.constant 0.000000e+00 : f32
    %28 = vector.broadcast %cst_29 : f32 to vector<32x256xf32>
    %29 = arith.maximumf %27, %28 : vector<32x256xf32>
    %30 = arith.addf %29, %17 : vector<32x256xf32>
    %31 = arith.truncf %30 : vector<32x256xf32> to vector<32x256xbf16>
    %cst_30 = arith.constant dense<0.000000e+00> : vector<16x256xf32>
    %32 = tpu.matmul %3, %31, %cst_30 {dimension_numbers = #tpu.dot_dimension_numbers<[1], [0], [0], [1], [0, 0, 1, 1], [], []>} : vector<16x32xbf16>, vector<32x256xbf16>, vector<16x256xf32> -> vector<16x256xf32>
    %33 = vector.broadcast %9 : vector<16x1xf32> to vector<16x256xf32>
    %34 = arith.addf %32, %33 : vector<16x256xf32>
    %cst_31 = arith.constant 0.000000e+00 : f32
    %35 = vector.broadcast %cst_31 : f32 to vector<16x256xf32>
    %36 = arith.maximumf %34, %35 : vector<16x256xf32>
    %37 = arith.truncf %36 : vector<16x256xf32> to vector<16x256xbf16>
    %cst_32 = arith.constant dense<0.000000e+00> : vector<32x256xf32>
    %38 = tpu.matmul %4, %37, %cst_32 {dimension_numbers = #tpu.dot_dimension_numbers<[1], [0], [0], [1], [0, 0, 1, 1], [], []>} : vector<32x16xbf16>, vector<16x256xbf16>, vector<32x256xf32> -> vector<32x256xf32>
    %39 = vector.broadcast %10 : vector<32x1xf32> to vector<32x256xf32>
    %40 = arith.addf %38, %39 : vector<32x256xf32>
    %cst_33 = arith.constant 0.000000e+00 : f32
    %41 = vector.broadcast %cst_33 : f32 to vector<32x256xf32>
    %42 = arith.maximumf %40, %41 : vector<32x256xf32>
    %43 = arith.addf %30, %42 : vector<32x256xf32>
    %44 = arith.truncf %43 : vector<32x256xf32> to vector<32x256xbf16>
    %cst_34 = arith.constant dense<0.000000e+00> : vector<1x256xf32>
    %45 = tpu.matmul %5, %44, %cst_34 {dimension_numbers = #tpu.dot_dimension_numbers<[1], [0], [0], [1], [0, 0, 1, 1], [], []>} : vector<1x32xbf16>, vector<32x256xbf16>, vector<1x256xf32> -> vector<1x256xf32>
    %46 = vector.broadcast %11 : vector<1x1xf32> to vector<1x256xf32>
    %47 = arith.addf %45, %46 : vector<1x256xf32>
    %c0_35 = arith.constant 0 : index
    %c0_36 = arith.constant 0 : index
    %c0_37 = arith.constant 0 : index
    %48 = vector.load %arg14[%c0_35, %c0_36, %c0_37] : memref<1x1x256xf32, #tpu.memory_space<vmem>>, vector<1x1x256xf32>
    %49 = vector.shape_cast %48 : vector<1x1x256xf32> to vector<1x256xf32>
    %50 = vector.shape_cast %47 : vector<1x256xf32> to vector<1x1x256xf32>
    tpu.vector_store %arg14[%c0_35, %c0_36, %c0_37], %50 {strides = array<i32>} : memref<1x1x256xf32, #tpu.memory_space<vmem>>, vector<1x1x256xf32>,
    return
  }
  func.func @transform_0(%arg0: i32) -> (i32, i32) {
    %c0_i32 = arith.constant 0 : i32
    %c0_i32_0 = arith.constant 0 : i32
    return %arg0, %c0_i32 : i32, i32
  }
  func.func @transform_1(%arg0: i32) -> (i32, i32) {
    %c0_i32 = arith.constant 0 : i32
    %c0_i32_0 = arith.constant 0 : i32
    %c0_i32_1 = arith.constant 0 : i32
    return %c0_i32, %c0_i32_0 : i32, i32
  }
  func.func @transform_2(%arg0: i32) -> (i32, i32) {
    %c0_i32 = arith.constant 0 : i32
    %c0_i32_0 = arith.constant 0 : i32
    %c0_i32_1 = arith.constant 0 : i32
    return %c0_i32, %c0_i32_0 : i32, i32
  }
  func.func @transform_3(%arg0: i32) -> (i32, i32) {
    %c0_i32 = arith.constant 0 : i32
    %c0_i32_0 = arith.constant 0 : i32
    %c0_i32_1 = arith.constant 0 : i32
    return %c0_i32, %c0_i32_0 : i32, i32
  }
  func.func @transform_4(%arg0: i32) -> (i32, i32) {
    %c0_i32 = arith.constant 0 : i32
    %c0_i32_0 = arith.constant 0 : i32
    %c0_i32_1 = arith.constant 0 : i32
    return %c0_i32, %c0_i32_0 : i32, i32
  }
  func.func @transform_5(%arg0: i32) -> (i32, i32) {
    %c0_i32 = arith.constant 0 : i32
    %c0_i32_0 = arith.constant 0 : i32
    %c0_i32_1 = arith.constant 0 : i32
    return %c0_i32, %c0_i32_0 : i32, i32
  }
  func.func @transform_6(%arg0: i32) -> (i32, i32) {
    %c0_i32 = arith.constant 0 : i32
    %c0_i32_0 = arith.constant 0 : i32
    %c0_i32_1 = arith.constant 0 : i32
    return %c0_i32, %c0_i32_0 : i32, i32
  }
  func.func @transform_7(%arg0: i32) -> (i32, i32) {
    %c0_i32 = arith.constant 0 : i32
    %c0_i32_0 = arith.constant 0 : i32
    %c0_i32_1 = arith.constant 0 : i32
    return %c0_i32, %c0_i32_0 : i32, i32
  }
  func.func @transform_8(%arg0: i32) -> (i32, i32) {
    %c0_i32 = arith.constant 0 : i32
    %c0_i32_0 = arith.constant 0 : i32
    %c0_i32_1 = arith.constant 0 : i32
    return %c0_i32, %c0_i32_0 : i32, i32
  }
  func.func @transform_9(%arg0: i32) -> (i32, i32) {
    %c0_i32 = arith.constant 0 : i32
    %c0_i32_0 = arith.constant 0 : i32
    %c0_i32_1 = arith.constant 0 : i32
    return %c0_i32, %c0_i32_0 : i32, i32
  }
  func.func @transform_10(%arg0: i32) -> (i32, i32) {
    %c0_i32 = arith.constant 0 : i32
    %c0_i32_0 = arith.constant 0 : i32
    %c0_i32_1 = arith.constant 0 : i32
    return %c0_i32, %c0_i32_0 : i32, i32
  }
  func.func @transform_11(%arg0: i32) -> (i32, i32) {
    %c0_i32 = arith.constant 0 : i32
    %c0_i32_0 = arith.constant 0 : i32
    %c0_i32_1 = arith.constant 0 : i32
    return %c0_i32, %c0_i32_0 : i32, i32
  }
  func.func @transform_12(%arg0: i32) -> (i32, i32) {
    %c0_i32 = arith.constant 0 : i32
    %c0_i32_0 = arith.constant 0 : i32
    %c0_i32_1 = arith.constant 0 : i32
    return %c0_i32, %c0_i32_0 : i32, i32
  }
  func.func @transform_13(%arg0: i32) -> (i32, i32, i32) {
    %c0_i32 = arith.constant 0 : i32
    %c0_i32_0 = arith.constant 0 : i32
    %c0_i32_1 = arith.constant 0 : i32
    return %arg0, %c0_i32, %c0_i32_0 : i32, i32, i32
  }
}

</mosaic_0001>

<bundles_post_ra>
// kernel: tpu_custom_call.1
= control target key start
LH: loop header
LB: loop body
LE: loop exit
PB: predicated region body
PF: predicated region fallthrough
CT: control target
= control target key end

     0   :  { %s1181_s0 = inlined_call_operand.vmem [shape: f32[256,8], index: 0, kind: input, shape index: {}]   ;;  %s1182_s1 = inlined_call_operand.vmem [shape: f32[32,8], index: 1, kind: input, shape index: {}]   ;;  %s1183_s2 = inlined_call_operand.vmem [shape: f32[32,1], index: 2, kind: input, shape index: {}]   ;;  %s1184_s3 = inlined_call_operand.vmem [shape: bf16[16,32], index: 3, kind: input, shape index: {}]   ;;  %s1185_s4 = inlined_call_operand.vmem [shape: f32[16,1], index: 4, kind: input, shape index: {}]   ;;  %s1186_s5 = inlined_call_operand.vmem [shape: bf16[32,16], index: 5, kind: input, shape index: {}]   ;;  %s1187_s6 = inlined_call_operand.vmem [shape: f32[32,1], index: 6, kind: input, shape index: {}]   ;;  %s1188_s7 = inlined_call_operand.vmem [shape: bf16[16,32], index: 7, kind: input, shape index: {}]   ;;  %s1189_s8 = inlined_call_operand.vmem [shape: f32[16,1], index: 8, kind: input, shape index: {}]   ;;  %s1190_s9 = inlined_call_operand.vmem [shape: bf16[32,16], index: 9, kind: input, shape index: {}]   ;;  %s1191_s10 = inlined_call_operand.vmem [shape: f32[32,1], index: 10, kind: input, shape index: {}]   ;;  %s1192_s11 = inlined_call_operand.vmem [shape: bf16[1,32], index: 11, kind: input, shape index: {}]   ;;  %s1193_s12 = inlined_call_operand.<no memory space> [shape: f32[1,1], index: 12, kind: input, shape index: {}]   ;;  %s1194_s13 = inlined_call_operand.hbm [shape: f32[1,1,256], index: 13, kind: output, shape index: {}]  }
   0x1   :  { %v18_v0 = vstv %s1193_s12 }
   0x2   :  { %19 = vst [vmem:[#allocation2] sm:$0x1] %v18_v0 }
   0x3   :  { %v97_v1 = vld [vmem:[%s1181_s0 + $0x78] sm:$0xff]  ;;  %vm134_vm0 = vcmask 64512   ;;  %v96_v3 = vld [vmem:[%s1181_s0 + $0x70] sm:$0xff]  ;;  %v95_v5 = vld [vmem:[%s1181_s0 + $0x68] sm:$0xff] }
   0x4   :  { %v113_v2 = vld [vmem:[%s1181_s0 + $0xf8] sm:$0xff]  ;;  %669 = vmatpush.xpose.msk.msra.mxu0 %vm134_vm0, %v97_v1  ;;  %v112_v4 = vld [vmem:[%s1181_s0 + $0xf0] sm:$0xff]  ;;  %v111_v6 = vld [vmem:[%s1181_s0 + $0xe8] sm:$0xff] }
   0x5   :  { %689 = vmatpush.xpose.msk.msra.mxu1 %vm134_vm0, %v113_v2 }
   0x8   :  { %670 = vmatpush.xpose.msk.msra.mxu0 %vm134_vm0, %v96_v3 }
   0x9   :  { %690 = vmatpush.xpose.msk.msra.mxu1 %vm134_vm0, %v112_v4 }
   0xa   :  { %20 = vsyncpa [#allocation4], 0  ;;  %v94_v7 = vld [vmem:[%s1181_s0 + $0x60] sm:$0xff]  ;;  %v93_v9 = vld [vmem:[%s1181_s0 + $0x58] sm:$0xff]  ;;  %v784_v14 = vmov 0   ;;  %vm328_vm1 = vcmask 261120  }
   0xb   :  { %v110_v8 = vld [vmem:[%s1181_s0 + $0xe0] sm:$0xff]  ;;  %v109_v10 = vld [vmem:[%s1181_s0 + $0xd8] sm:$0xff]  ;;  %v67_v11 = vld [vmem:[%s1183_s2 + $0x10] sm:$0xff]  ;;  %755 = vset.pattern.permute.xlu0 %v784_v14  ;;  %756 = vset.pattern.permute.xlu1 %v784_v14  ;;  %vm396_vm2 = vcmask 130048   ;;  %s785_s23 = smov [#allocation3]   ;;  %s660_s26 = sshll.u32 %s1194_s13, 4  ;;  %s661_s26 = int_to_ptr.hbm [resolvable:$true] %s660_s26 }
   0xc   :  { %671 = vmatpush.xpose.msk.msra.mxu0 %vm134_vm0, %v95_v5  ;;  %v92_v12 = vld [vmem:[%s1181_s0 + $0x50] sm:$0xff]  ;;  %126 = vperm.xlu0 %755, %v67_v11   ;;  %v65_v15 = vld [vmem:[%s1183_s2] sm:$0xff]  ;;  %v91_v16 = vld [vmem:[%s1181_s0 + $0x48] sm:$0xff]  ;;  %vm645_vm3 = vcmask 1040384  }
   0xd   :  { %691 = vmatpush.xpose.msk.msra.mxu1 %vm134_vm0, %v111_v6  ;;  %v108_v13 = vld [vmem:[%s1181_s0 + $0xd0] sm:$0xff]  ;;  %757 = vset.pattern.permute.xlu2 %v784_v14  ;;  %v107_v17 = vld [vmem:[%s1181_s0 + $0xc8] sm:$0xff]  ;;  %v68_v18 = vld [vmem:[%s1183_s2 + $0x18] sm:$0xff] }
   0xe   :  { %116 = vperm.xlu1 %756, %v65_v15   ;;  %v90_v19 = vld [vmem:[%s1181_s0 + $0x40] sm:$0xff]  ;;  %v66_v21 = vld [vmem:[%s1183_s2 + $0x8] sm:$0xff]  ;;  %v89_v22 = vld [vmem:[%s1181_s0 + $0x38] sm:$0xff] }
   0xf   :  { %v106_v20 = vld [vmem:[%s1181_s0 + $0xc0] sm:$0xff]  ;;  %v105_v23 = vld [vmem:[%s1181_s0 + $0xb8] sm:$0xff]  ;;  %v73_v24 = vld [vmem:[%s1187_s6 + $0x10] sm:$0xff] }
  0x10   :  { %672 = vmatpush.xpose.msk.msra.mxu0 %vm134_vm0, %v94_v7  ;;  %v88_v25 = vld [vmem:[%s1181_s0 + $0x30] sm:$0xff]  ;;  %v74_v27 = vld [vmem:[%s1187_s6 + $0x18] sm:$0xff]  ;;  %v87_v28 = vld [vmem:[%s1181_s0 + $0x28] sm:$0xff] }
  0x11   :  { %692 = vmatpush.xpose.msk.msra.mxu1 %vm134_vm0, %v110_v8  ;;  %v104_v26 = vld [vmem:[%s1181_s0 + $0xb0] sm:$0xff]  ;;  %v103_v29 = vld [vmem:[%s1181_s0 + $0xa8] sm:$0xff]  ;;  %v86_v31 = vld [vmem:[%s1181_s0 + $0x20] sm:$0xff] }
  0x12   :  { %v72_v30 = vld [vmem:[%s1187_s6 + $0x8] sm:$0xff]  ;;  %v102_v32 = vld [vmem:[%s1181_s0 + $0xa0] sm:$0xff]  ;;  %v85_v34 = vld [vmem:[%s1181_s0 + $0x18] sm:$0xff] }
  0x13   :  { %v75_v33 = vld [vmem:[%s1189_s8] sm:$0xff]  ;;  %v101_v35 = vld [vmem:[%s1181_s0 + $0x98] sm:$0xff]  ;;  %v79_v36 = vld [vmem:[%s1191_s10 + $0x10] sm:$0xff] }
  0x14   :  { %673 = vmatpush.xpose.msk.msra.mxu0 %vm134_vm0, %v93_v9  ;;  %131 = vperm.xlu0 %755, %v68_v18   ;;  %v84_v37 = vld [vmem:[%s1181_s0 + $0x10] sm:$0xff]  ;;  %v80_v39 = vld [vmem:[%s1191_s10 + $0x18] sm:$0xff]  ;;  %v83_v40 = vld [vmem:[%s1181_s0 + $0x8] sm:$0xff] }
  0x15   :  { %693 = vmatpush.xpose.msk.msra.mxu1 %vm134_vm0, %v109_v10  ;;  %v100_v38 = vld [vmem:[%s1181_s0 + $0x90] sm:$0xff]  ;;  %v99_v41 = vld [vmem:[%s1181_s0 + $0x88] sm:$0xff]  ;;  %v82_v43 = vld [vmem:[%s1181_s0] sm:$0xff] }
  0x16   :  { %121 = vperm.xlu1 %756, %v66_v21   ;;  %v78_v42 = vld [vmem:[%s1191_s10 + $0x8] sm:$0xff]  ;;  %v98_v44 = vld [vmem:[%s1181_s0 + $0x80] sm:$0xff]  ;;  %v50_v48 = vld [vmem:[%s1182_s1 + $0x10] sm:$0xff]  ;;  %s658_s0 = sshll.u32 %s785_s23, 4  ;;  %s659_s0 = int_to_ptr.vmem [resolvable:$true] %s658_s0 }
  0x17   :  { %v81_v45 = vld [vmem:[#allocation2] sm:$0x1]  ;;  %v49_v47 = vld [vmem:[%s1182_s1 + $0x8] sm:$0xff]  ;;  %v51_v49 = vld [vmem:[%s1182_s1 + $0x18] sm:$0xff] }
  0x18   :  { %674 = vmatpush.xpose.msk.msra.mxu0 %vm134_vm0, %v92_v12  ;;  %v48_v46 = vld [vmem:[%s1182_s1] sm:$0xff]  ;;  %v70_v55 = vld [vmem:[%s1185_s4 + $0x8] sm:$0xff] }
  0x19   :  { %694 = vmatpush.xpose.msk.msra.mxu1 %vm134_vm0, %v108_v13  ;;  %v69_v52 = vld [vmem:[%s1185_s4] sm:$0xff] }
  0x1a   :  { %315 = vperm.xlu2 %757, %v69_v52   ;;  %v71_v60 = vld [vmem:[%s1187_s6] sm:$0xff] }
  0x1c   :  { %675 = vmatpush.xpose.msk.msra.mxu0 %vm134_vm0, %v91_v16  ;;  %378 = vperm.xlu0 %755, %v73_v24  }
  0x1d   :  { %695 = vmatpush.xpose.msk.msra.mxu1 %vm134_vm0, %v107_v17  ;;  %v76_v17 = vld [vmem:[%s1189_s8 + $0x8] sm:$0xff] }
  0x1e   :  { %383 = vperm.xlu1 %756, %v74_v27  }
  0x20   :  { %676 = vmatpush.xpose.msk.msra.mxu0 %vm134_vm0, %v90_v19 }
  0x21   :  { %696 = vmatpush.xpose.msk.msra.mxu1 %vm134_vm0, %v106_v20 }
  0x22   :  { %320 = vperm.xlu2 %757, %v70_v55  }
  0x24   :  { %677 = vmatpush.xpose.msk.msra.mxu0 %vm134_vm0, %v89_v22  ;;  %373 = vperm.xlu0 %755, %v72_v30   ;;  %v747_v22 = vld [vmem:[%s1184_s3] sm:$0xff] }
  0x25   :  { %697 = vmatpush.xpose.msk.msra.mxu1 %vm134_vm0, %v105_v23  ;;  %v77_v23 = vld [vmem:[%s1191_s10] sm:$0xff] }
  0x26   :  { %463 = vperm.xlu1 %756, %v75_v33  }
  0x28   :  { %678 = vmatpush.xpose.msk.msra.mxu0 %vm134_vm0, %v88_v25 }
  0x29   :  { %698 = vmatpush.xpose.msk.msra.mxu1 %vm134_vm0, %v104_v26 }
  0x2a   :  { %368 = vperm.xlu2 %757, %v71_v60  }
  0x2c   :  { %679 = vmatpush.xpose.msk.msra.mxu0 %vm134_vm0, %v87_v28  ;;  %525 = vperm.xlu0 %755, %v79_v36  }
  0x2d   :  { %699 = vmatpush.xpose.msk.msra.mxu1 %vm134_vm0, %v103_v29 }
  0x2e   :  { %530 = vperm.xlu1 %756, %v80_v39  }
  0x30   :  { %680 = vmatpush.xpose.msk.msra.mxu0 %vm134_vm0, %v86_v31 }
  0x31   :  { %700 = vmatpush.xpose.msk.msra.mxu1 %vm134_vm0, %v102_v32 }
  0x32   :  { %468 = vperm.xlu2 %757, %v76_v17  }
  0x34   :  { %681 = vmatpush.xpose.msk.msra.mxu0 %vm134_vm0, %v85_v34  ;;  %520 = vperm.xlu0 %755, %v78_v42  }
  0x35   :  { %701 = vmatpush.xpose.msk.msra.mxu1 %vm134_vm0, %v101_v35 }
  0x36   :  { %609 = vperm.xlu1 %756, %v81_v45  }
  0x38   :  { %682 = vmatpush.xpose.msk.msra.mxu0 %vm134_vm0, %v84_v37 }
  0x39   :  { %702 = vmatpush.xpose.msk.msra.mxu1 %vm134_vm0, %v100_v38 }
  0x3a   :  { %515 = vperm.xlu2 %757, %v77_v23  }
  0x3c   :  { %683 = vmatpush.xpose.msk.msra.mxu0 %vm134_vm0, %v83_v40  ;;  %v748_v40 = vld [vmem:[%s1186_s5] sm:$0xff] }
  0x3d   :  { %703 = vmatpush.xpose.msk.msra.mxu1 %vm134_vm0, %v99_v41  ;;  %v749_v41 = vld [vmem:[%s1186_s5 + $0x8] sm:$0xff] }
  0x40   :  { %684 = vmatpush.xpose.msk.msra.mxu0 %vm134_vm0, %v82_v43 }
  0x41   :  { %704 = vmatpush.xpose.msk.msra.mxu1 %vm134_vm0, %v98_v44 }
  0x43   :  { %685 = vmatmul.msk.f32.vlgmr.msra.gmra.mxu0 %vm134_vm0, %v48_v46 }
  0x44   :  { %705 = vmatmul.msk.f32.vlgmr.msra.gmra.mxu1 %vm134_vm0, %v48_v46 }
  0x4b   :  { %686 = vmatmul.msk.f32.gmra.mxu0 %vm134_vm0, %v49_v47 }
  0x4c   :  { %706 = vmatmul.msk.f32.gmra.mxu1 %vm134_vm0, %v49_v47 }
  0x53   :  { %687 = vmatmul.msk.f32.gmra.mxu0 %vm134_vm0, %v50_v48 }
  0x54   :  { %707 = vmatmul.msk.f32.gmra.mxu1 %vm134_vm0, %v50_v48 }
  0x5b   :  { %688 = vmatmul.msk.f32.gmra.mxu0 %vm134_vm0, %v51_v49 }
  0x5c   :  { %708 = vmatmul.msk.f32.gmra.mxu1 %vm134_vm0, %v51_v49 }
  0x74   :  { %v316_v24 = vpop.permute.xlu2 %315 }
  0x7c   :  { %v321_v27 = vpop.permute.xlu2 %320 }
  0x7e   :  { %v127_v56 = vpop.permute.xlu0 %126 }
  0x80   :  { %v117_v57 = vpop.permute.xlu1 %116 }
  0x86   :  { %v132_v61 = vpop.permute.xlu0 %131 }
  0x88   :  { %v122_v62 = vpop.permute.xlu1 %121 }
  0x8e   :  { %v379_v46 = vpop.permute.xlu0 %378 }
  0x90   :  { %v384_v52 = vpop.permute.xlu1 %383 }
  0xc0   :  { %v260_v50 = vpop.f32.mrf.mxu0 }
  0xc1   :  { %v289_v51 = vpop.f32.mrf.mxu1  ;;  %v1061_v7 = vadd.f32 %v260_v50, %v117_v57 }
  0xc2   :  { %v1063_v8 = vadd.f32 %v289_v51, %v117_v57  ;;  %v374_v51 = vpop.permute.xlu0 %373 }
  0xc3   :  { %v301_v18 = vmax.f32 %v1061_v7, 0.0 }
  0xc4   :  { %v302_v19 = vmax.f32 %v1063_v8, 0.0 }
  0xc8   :  { %v263_v53 = vpop.f32.mrf.mxu0 }
  0xc9   :  { %v292_v54 = vpop.f32.mrf.mxu1  ;;  %v1053_v3 = vadd.f32 %v263_v53, %v122_v62  ;;  %v369_v53 = vpop.permute.xlu2 %368 }
  0xca   :  { %v1055_v4 = vadd.f32 %v292_v54, %v122_v62 }
  0xcb   :  { %v303_v13 = vmax.f32 %v1053_v3, 0.0 }
  0xcc   :  { %v304_v14 = vmax.f32 %v1055_v4, 0.0 }
  0xcd   :  { %v309_v20 = vpack.c.bf16 %v303_v13, %v301_v18 }
  0xce   :  { %v310_v21 = vpack.c.bf16 %v304_v14, %v302_v19 }
  0xd0   :  { %v266_v58 = vpop.f32.mrf.mxu0 }
  0xd1   :  { %v295_v59 = vpop.f32.mrf.mxu1  ;;  %v1049_v63 = vadd.f32 %v266_v58, %v127_v56 }
  0xd2   :  { %v1051_v0 = vadd.f32 %v295_v59, %v127_v56 }
  0xd3   :  { %v305_v9 = vmax.f32 %v1049_v63, 0.0 }
  0xd4   :  { %v306_v10 = vmax.f32 %v1051_v0, 0.0 }
  0xd8   :  { %v269_v1 = vpop.f32.mrf.mxu0 }
  0xd9   :  { %v298_v2 = vpop.f32.mrf.mxu1  ;;  %v1057_v5 = vadd.f32 %v269_v1, %v132_v61 }
  0xda   :  { %v1059_v6 = vadd.f32 %v298_v2, %v132_v61 }
  0xdb   :  { %v307_v11 = vmax.f32 %v1057_v5, 0.0 }
  0xdc   :  { %v308_v12 = vmax.f32 %v1059_v6, 0.0 }
  0xdd   :  { %v311_v15 = vpack.c.bf16 %v307_v11, %v305_v9 }
  0xde   :  { %v312_v16 = vpack.c.bf16 %v308_v12, %v306_v10 }
  0xdf   :  { %338 = vmatpush.bf16.msra.mxu2 %v311_v15 }
  0xe0   :  { %352 = vmatpush.bf16.msra.mxu3 %v312_v16 }
  0xe3   :  { %339 = vmatpush.bf16.msra.mxu2 %v309_v20 }
  0xe4   :  { %353 = vmatpush.bf16.msra.mxu3 %v310_v21 }
  0xe6   :  { %713 = vmatmul.msk.bf16.vlgmr.msra.gmra.mxu2 %vm328_vm1, %v747_v22 }
  0xe7   :  { %714 = vmatmul.msk.bf16.vlgmr.msra.gmra.mxu3 %vm328_vm1, %v747_v22 }
 0x169   :  { %v341_v25 = vpop.f32.mrf.mxu2 }
 0x16a   :  { %v355_v26 = vpop.f32.mrf.mxu3  ;;  %v342_v28 = vadd.f32 %v341_v25, %v316_v24 }
 0x16b   :  { %v356_v29 = vadd.f32 %v355_v26, %v316_v24 }
 0x16c   :  { %v360_v34 = vmax.f32 %v342_v28, 0.0 }
 0x16d   :  { %v361_v35 = vmax.f32 %v356_v29, 0.0 }
 0x171   :  { %v343_v30 = vpop.f32.mrf.mxu2 }
 0x172   :  { %v357_v31 = vpop.f32.mrf.mxu3  ;;  %v344_v32 = vadd.f32 %v343_v30, %v321_v27 }
 0x173   :  { %v358_v33 = vadd.f32 %v357_v31, %v321_v27 }
 0x174   :  { %v362_v36 = vmax.f32 %v344_v32, 0.0 }
 0x175   :  { %v363_v37 = vmax.f32 %v358_v33, 0.0 }
 0x176   :  { %v364_v38 = vpack.c.bf16 %v362_v36, %v360_v34  ;;  %v752_v36 = vld [vmem:[%s1190_s9 + $0x8] sm:$0xff] }
 0x177   :  { %v365_v39 = vpack.c.bf16 %v363_v37, %v361_v35  ;;  %v751_v35 = vld [vmem:[%s1190_s9] sm:$0xff] }
 0x178   :  { %410 = vmatpush.bf16.msrb.mxu2 %v364_v38 }
 0x179   :  { %429 = vmatpush.bf16.msrb.mxu3 %v365_v39 }
 0x17b   :  { %723 = vmatmul.msk.bf16.vlgmr.msrb.gmra.mxu2 %vm396_vm2, %v748_v40 }
 0x17c   :  { %725 = vmatmul.msk.bf16.vlgmr.msrb.gmra.mxu3 %vm396_vm2, %v748_v40 }
 0x18b   :  { %724 = vmatmul.msk.bf16.gmra.mxu2 %vm396_vm2, %v749_v41 }
 0x18c   :  { %726 = vmatmul.msk.bf16.gmra.mxu3 %vm396_vm2, %v749_v41  ;;  %v526_v41 = vpop.permute.xlu0 %525 }
 0x1fe   :  { %v412_v42 = vpop.f32.mrf.mxu2 }
 0x1ff   :  { %v431_v43 = vpop.f32.mrf.mxu3  ;;  %v413_v56 = vadd.f32 %v412_v42, %v369_v53 }
 0x200   :  { %v432_v57 = vadd.f32 %v431_v43, %v369_v53 }
 0x201   :  { %v441_v20 = vmax.f32 %v413_v56, 0.0 }
 0x202   :  { %v442_v21 = vmax.f32 %v432_v57, 0.0 }
 0x204   :  { %v1144_v6 = vadd.f32 %v442_v21, %v302_v19 }
 0x206   :  { %v414_v44 = vpop.f32.mrf.mxu2 }
 0x207   :  { %v433_v45 = vpop.f32.mrf.mxu3  ;;  %v415_v54 = vadd.f32 %v414_v44, %v374_v51 }
 0x208   :  { %v434_v55 = vadd.f32 %v433_v45, %v374_v51 }
 0x209   :  { %v443_v2 = vmax.f32 %v415_v54, 0.0 }
 0x20a   :  { %v444_v15 = vmax.f32 %v434_v55, 0.0 }
 0x20b   :  { %v1128_v26 = vadd.f32 %v443_v2, %v303_v13 }
 0x20c   :  { %v1132_v63 = vadd.f32 %v444_v15, %v304_v14 }
 0x20e   :  { %v417_v47 = vpop.f32.mrf.mxu2  ;;  %v458_v4 = vpack.c.bf16 %v1132_v63, %v1144_v6 }
 0x20f   :  { %v436_v48 = vpop.f32.mrf.mxu3  ;;  %v418_v49 = vadd.f32 %v417_v47, %v379_v46 }
 0x210   :  { %v437_v50 = vadd.f32 %v436_v48, %v379_v46  ;;  %v521_v46 = vpop.permute.xlu0 %520 }
 0x211   :  { %v445_v60 = vmax.f32 %v418_v49, 0.0 }
 0x212   :  { %v446_v61 = vmax.f32 %v437_v50, 0.0 }
 0x213   :  { %v1112_v22 = vadd.f32 %v445_v60, %v305_v9  ;;  %v1140_v9 = vadd.f32 %v441_v20, %v301_v18 }
 0x214   :  { %v1116_v23 = vadd.f32 %v446_v61, %v306_v10  ;;  %v750_v10 = vld [vmem:[%s1188_s7] sm:$0xff] }
 0x215   :  { %v457_v3 = vpack.c.bf16 %v1128_v26, %v1140_v9 }
 0x216   :  { %v419_v58 = vpop.f32.mrf.mxu2 }
 0x217   :  { %v438_v59 = vpop.f32.mrf.mxu3  ;;  %v420_v62 = vadd.f32 %v419_v58, %v384_v52 }
 0x218   :  { %v439_v1 = vadd.f32 %v438_v59, %v384_v52 }
 0x219   :  { %v447_v16 = vmax.f32 %v420_v62, 0.0 }
 0x21a   :  { %v448_v17 = vmax.f32 %v439_v1, 0.0 }
 0x21b   :  { %v1120_v24 = vadd.f32 %v447_v16, %v307_v11  ;;  %v464_v11 = vpop.permute.xlu1 %463 }
 0x21c   :  { %v1124_v25 = vadd.f32 %v448_v17, %v308_v12  ;;  %v469_v12 = vpop.permute.xlu2 %468 }
 0x21d   :  { %v459_v0 = vpack.c.bf16 %v1120_v24, %v1112_v22 }
 0x21e   :  { %v460_v5 = vpack.c.bf16 %v1124_v25, %v1116_v23 }
 0x21f   :  { %485 = vmatpush.bf16.msra.mxu2 %v459_v0 }
 0x220   :  { %499 = vmatpush.bf16.msra.mxu3 %v460_v5 }
 0x223   :  { %486 = vmatpush.bf16.msra.mxu2 %v457_v3  ;;  %v531_v47 = vpop.permute.xlu1 %530 }
 0x224   :  { %500 = vmatpush.bf16.msra.mxu3 %v458_v4  ;;  %v516_v48 = vpop.permute.xlu2 %515 }
 0x226   :  { %731 = vmatmul.msk.bf16.vlgmr.msra.gmra.mxu2 %vm328_vm1, %v750_v10 }
 0x227   :  { %732 = vmatmul.msk.bf16.vlgmr.msra.gmra.mxu3 %vm328_vm1, %v750_v10 }
 0x2a9   :  { %v488_v7 = vpop.f32.mrf.mxu2 }
 0x2aa   :  { %v502_v8 = vpop.f32.mrf.mxu3  ;;  %v489_v13 = vadd.f32 %v488_v7, %v464_v11 }
 0x2ab   :  { %v503_v14 = vadd.f32 %v502_v8, %v464_v11 }
 0x2ac   :  { %v507_v29 = vmax.f32 %v489_v13, 0.0 }
 0x2ad   :  { %v508_v30 = vmax.f32 %v503_v14, 0.0 }
 0x2b1   :  { %v490_v18 = vpop.f32.mrf.mxu2 }
 0x2b2   :  { %v504_v19 = vpop.f32.mrf.mxu3  ;;  %v491_v27 = vadd.f32 %v490_v18, %v469_v12 }
 0x2b3   :  { %v505_v28 = vadd.f32 %v504_v19, %v469_v12 }
 0x2b4   :  { %v509_v31 = vmax.f32 %v491_v27, 0.0 }
 0x2b5   :  { %v510_v32 = vmax.f32 %v505_v28, 0.0 }
 0x2b6   :  { %v511_v33 = vpack.c.bf16 %v509_v31, %v507_v29 }
 0x2b7   :  { %v512_v34 = vpack.c.bf16 %v510_v32, %v508_v30 }
 0x2b8   :  { %556 = vmatpush.bf16.msrb.mxu2 %v511_v33 }
 0x2b9   :  { %575 = vmatpush.bf16.msrb.mxu3 %v512_v34 }
 0x2bb   :  { %741 = vmatmul.msk.bf16.vlgmr.msrb.gmra.mxu2 %vm396_vm2, %v751_v35 }
 0x2bc   :  { %743 = vmatmul.msk.bf16.vlgmr.msrb.gmra.mxu3 %vm396_vm2, %v751_v35 }
 0x2cb   :  { %742 = vmatmul.msk.bf16.gmra.mxu2 %vm396_vm2, %v752_v36 }
 0x2cc   :  { %744 = vmatmul.msk.bf16.gmra.mxu3 %vm396_vm2, %v752_v36 }
 0x33e   :  { %v558_v37 = vpop.f32.mrf.mxu2 }
 0x33f   :  { %v577_v38 = vpop.f32.mrf.mxu3  ;;  %v559_v51 = vadd.f32 %v558_v37, %v516_v48 }
 0x340   :  { %v578_v52 = vadd.f32 %v577_v38, %v516_v48 }
 0x341   :  { %v587_v1 = vmax.f32 %v559_v51, 0.0 }
 0x342   :  { %v588_v2 = vmax.f32 %v578_v52, 0.0 }
 0x343   :  { %v595_v4 = vadd.f32 %v587_v1, %v1140_v9 }
 0x344   :  { %v596_v10 = vadd.f32 %v588_v2, %v1144_v6 }
 0x346   :  { %v560_v39 = vpop.f32.mrf.mxu2 }
 0x347   :  { %v579_v40 = vpop.f32.mrf.mxu3  ;;  %v561_v49 = vadd.f32 %v560_v39, %v521_v46 }
 0x348   :  { %v580_v50 = vadd.f32 %v579_v40, %v521_v46 }
 0x349   :  { %v589_v59 = vmax.f32 %v561_v49, 0.0 }
 0x34a   :  { %v590_v60 = vmax.f32 %v580_v50, 0.0 }
 0x34b   :  { %v597_v21 = vadd.f32 %v589_v59, %v1128_v26  ;;  %v648_v26 = vlaneseq }
 0x34c   :  { %v598_v0 = vadd.f32 %v590_v60, %v1132_v63 }
 0x34d   :  { %v603_v7 = vpack.c.bf16 %v597_v21, %v595_v4  ;;  %vm650_vm4 = vcmp.lt.s32.totalorder %v648_v26, 256 }
 0x34e   :  { %v563_v42 = vpop.f32.mrf.mxu2 }
 0x34f   :  { %v582_v43 = vpop.f32.mrf.mxu3  ;;  %v564_v44 = vadd.f32 %v563_v42, %v526_v41 }
 0x350   :  { %v583_v45 = vadd.f32 %v582_v43, %v526_v41 }
 0x351   :  { %v591_v55 = vmax.f32 %v564_v44, 0.0 }
 0x352   :  { %v592_v56 = vmax.f32 %v583_v45, 0.0 }
 0x353   :  { %v599_v15 = vadd.f32 %v591_v55, %v1112_v22  ;;  %v604_v22 = vpack.c.bf16 %v598_v0, %v596_v10 }
 0x354   :  { %v600_v16 = vadd.f32 %v592_v56, %v1116_v23  ;;  %v64_v23 = vld [vmem:[%s1192_s11] sm:$0x1] }
 0x356   :  { %v565_v53 = vpop.f32.mrf.mxu2 }
 0x357   :  { %v584_v54 = vpop.f32.mrf.mxu3  ;;  %v566_v57 = vadd.f32 %v565_v53, %v531_v47 }
 0x358   :  { %v585_v58 = vadd.f32 %v584_v54, %v531_v47 }
 0x359   :  { %v593_v61 = vmax.f32 %v566_v57, 0.0 }
 0x35a   :  { %v594_v62 = vmax.f32 %v585_v58, 0.0 }
 0x35b   :  { %v601_v17 = vadd.f32 %v593_v61, %v1120_v24  ;;  %v610_v24 = vpop.permute.xlu1 %609 }
 0x35c   :  { %v602_v20 = vadd.f32 %v594_v62, %v1124_v25  ;;  %v612_v25 = vperm.slane %v610_v24, 0 }
 0x35d   :  { %v605_v5 = vpack.c.bf16 %v601_v17, %v599_v15 }
 0x35e   :  { %v606_v3 = vpack.c.bf16 %v602_v20, %v600_v16 }
 0x35f   :  { %622 = vmatpush.bf16.msrb.mxu0 %v605_v5 }
 0x360   :  { %635 = vmatpush.bf16.msrb.mxu1 %v606_v3 }
 0x363   :  { %623 = vmatpush.bf16.msrb.mxu0 %v603_v7 }
 0x364   :  { %636 = vmatpush.bf16.msrb.mxu1 %v604_v22 }
 0x366   :  { %745 = vmatmul.msk.bf16.vlgmr.msrb.gmra.mxu0 %vm328_vm1, %v64_v23 }
 0x367   :  { %746 = vmatmul.msk.bf16.vlgmr.msrb.gmra.mxu1 %vm328_vm1, %v64_v23 }
 0x3e3   :  { %v625_v63 = vpop.f32.mrf.mxu0 }
 0x3e4   :  { %v638_v9 = vpop.f32.mrf.mxu1  ;;  %v626_v8 = vadd.f32 %v625_v63, %v612_v25 }
 0x3e5   :  { %v639_v6 = vadd.f32 %v638_v9, %v612_v25 }
 0x3e7   :  { %v644_v11 = vrot.slane %v639_v6, 7 }
 0x3e9   :  { %v646_v12 = vsel %vm645_vm3, %v626_v8, %v644_v11 }
 0x3ea   :  { %652 = vst.msk [vmem:[#allocation3] sm:$0x3] %vm650_vm4, %v646_v12 }
 0x3eb   :  { %663 = dma.vmem_to_hbm [thread:$0]  %s659_s0, 32, %s661_s26, [#allocation4]   ;;  %v627_v13 = vpop.f32.mrf.mxu0 }
 0x3ec   :  { %v640_v14 = vpop.f32.mrf.mxu1 }
 0x3ed   :  { %782 = dma.done.wait [#allocation4], 32  }
 0x3ee   :  { %783 = vsyncadd [#allocation4], 4294967264 }
 0x3ef   :  { %668 = vsyncpa [#allocation4], 1 }

</bundles_post_ra>
